<compile_context>
chip_gen: v5e
topology: v5e:2x2
jax: 0.10.0
libtpu: 0.0.40
codegen_flags: <defaults>
</compile_context>

<pallas_src>
import math

import jax
import jax.numpy as jnp
from jax.experimental import pallas as pl
from jax.experimental.pallas import tpu as pltpu


def _encoder_kernel(x_ref, w1_ref, b1_ref, wh_ref, bh_ref, out_ref):
    # Layer 1: [TILE_B, Din_p] @ [Din_p, H_p] -> f32, bias + ReLU in f32.
    h = jnp.dot(x_ref[...], w1_ref[...], preferred_element_type=jnp.float32)
    h = jnp.maximum(h + b1_ref[...], 0.0)
    # Fused mu|logvar head: [TILE_B, H_p] @ [H_p, N_p] -> f32.
    h = h.astype(wh_ref.dtype)  # bf16 operands for the MXU; accumulate f32.
    out_ref[...] = (jnp.dot(h, wh_ref[...], preferred_element_type=jnp.float32)
                    + bh_ref[...]).astype(out_ref.dtype)


def _round_up(n, m):
    return ((n + m - 1) // m) * m


def _pad_to(a, shape):
    return jnp.pad(a, [(0, s - d) for d, s in zip(a.shape, shape)])


def encoder_forward(x, w1, b1, wmu, bmu, wlv, blv, *, tile_b=512):
    """x: [B, input_dim]; weights stored [in, out]. Returns (mu, logvar)."""
    B, din = x.shape
    hidden = w1.shape[1]
    latent = wmu.shape[1]

    # --- fuse the two heads into one wider GEMM ---
    wcat = jnp.concatenate([wmu, wlv], axis=1)        # [hidden, 2*latent]
    bcat = jnp.concatenate([bmu, blv], axis=1)        # [1, 2*latent]

    # --- lane-dense padding (multiples of 128 on feature axes, 8 on batch) ---
    din_p = _round_up(din, 128)
    hid_p = _round_up(hidden, 128)
    n_p = _round_up(2 * latent, 128)
    tile_b = min(tile_b, _round_up(B, 8))             # small batches: one tile
    b_p = _round_up(B, tile_b)

    # bf16 operands for the MXU; biases stay f32 for the epilogue.
    x_p = _pad_to(x, (b_p, din_p)).astype(jnp.bfloat16)
    w1_p = _pad_to(w1, (din_p, hid_p)).astype(jnp.bfloat16)
    b1_p = _pad_to(b1, (1, hid_p)).astype(jnp.float32)
    wcat_p = _pad_to(wcat, (hid_p, n_p)).astype(jnp.bfloat16)
    bcat_p = _pad_to(bcat, (1, n_p)).astype(jnp.float32)

    grid = (b_p // tile_b,)

    flops = 2 * b_p * (din_p * hid_p + hid_p * n_p)
    bytes_accessed = (x_p.size * 2 + w1_p.size * 2 + wcat_p.size * 2
                      + b1_p.size * 4 + bcat_p.size * 4 + b_p * n_p * 4)

    out = pl.pallas_call(
        _encoder_kernel,
        out_shape=jax.ShapeDtypeStruct((b_p, n_p), jnp.float32),
        grid=grid,
        in_specs=[
            pl.BlockSpec((tile_b, din_p), lambda i: (i, 0)),   # x: streamed
            pl.BlockSpec((din_p, hid_p), lambda i: (0, 0)),    # W1: resident
            pl.BlockSpec((1, hid_p), lambda i: (0, 0)),        # b1: resident
            pl.BlockSpec((hid_p, n_p), lambda i: (0, 0)),      # W[mu|lv]: resident
            pl.BlockSpec((1, n_p), lambda i: (0, 0)),          # b[mu|lv]: resident
        ],
        out_specs=pl.BlockSpec((tile_b, n_p), lambda i: (i, 0)),
        compiler_params=pltpu.CompilerParams(
            dimension_semantics=("parallel",)),
        cost_estimate=pl.CostEstimate(
            flops=flops, transcendentals=0, bytes_accessed=bytes_accessed),
    )(x_p, w1_p, b1_p, wcat_p, bcat_p)

    out = out[:B]
    mu = out[:, :latent]
    logvar = out[:, latent:2 * latent]

    # torch .squeeze(): drops the batch dim when B == 1.
    # TODO(synk): torch .squeeze() would also drop a latent dim of size 1.
    if B == 1:
        mu, logvar = mu[0], logvar[0]
    return mu, logvar


def _xavier_uniform(key, fan_in, fan_out, gain=0.5):
    # matches nn.init.xavier_uniform_(weight, gain=0.5); stored as [in, out]
    limit = gain * math.sqrt(6.0 / (fan_in + fan_out))
    return jax.random.uniform(key, (fan_in, fan_out), jnp.float32, -limit, limit)


if __name__ == "__main__":
    # hidden_size_rule of length 2 -> layer_sizes = [input_dim, hidden, latent]
    batch = 8
    input_dim = 32
    hidden = 64
    latent = 16

    key = jax.random.PRNGKey(0)
    kx, k1, kmu, klv = jax.random.split(key, 4)

    x = jax.random.normal(kx, (batch, input_dim), jnp.float32)

    # weights_init: xavier_uniform(gain=0.5), biases zero (kept 2D for TPU layout)
    w1 = _xavier_uniform(k1, input_dim, hidden)
    b1 = jnp.zeros((1, hidden), jnp.float32)
    wmu = _xavier_uniform(kmu, hidden, latent)
    bmu = jnp.zeros((1, latent), jnp.float32)
    wlv = _xavier_uniform(klv, hidden, latent)
    blv = jnp.zeros((1, latent), jnp.float32)

    mu, logvar = encoder_forward(x, w1, b1, wmu, bmu, wlv, blv)
    jax.block_until_ready((mu, logvar))

    # Reference in plain JAX with the same bf16-operand / f32-accumulate recipe.
    xb, w1b = x.astype(jnp.bfloat16), w1.astype(jnp.bfloat16)
    h_ref = jnp.maximum(
        jnp.dot(xb, w1b, preferred_element_type=jnp.float32) + b1, 0.0)
    hb = h_ref.astype(jnp.bfloat16)
    mu_ref = jnp.dot(hb, wmu.astype(jnp.bfloat16),
                     preferred_element_type=jnp.float32) + bmu
    lv_ref = jnp.dot(hb, wlv.astype(jnp.bfloat16),
                     preferred_element_type=jnp.float32) + blv

    assert jnp.allclose(mu, mu_ref, atol=1e-3, rtol=1e-3), "mu mismatch"
    assert jnp.allclose(logvar, lv_ref, atol=1e-3, rtol=1e-3), "logvar mismatch"

    # Sanity vs. full-f32 torch semantics (bf16 operand error only).
    h32 = jnp.maximum(x @ w1 + b1, 0.0)
    assert jnp.allclose(mu, h32 @ wmu + bmu, atol=5e-2), "mu far from f32 ref"
    assert jnp.allclose(logvar, h32 @ wlv + blv, atol=5e-2), "logvar far from f32 ref"

    print("KERNEL_OK")
</pallas_src>

<mosaic_0001>
module attributes {stable_mosaic.version = 11 : i64} {
  func.func @_encoder_kernel(%arg0: i32, %arg1: memref<8x128xbf16, #tpu.memory_space<vmem>>, %arg2: memref<128x128xbf16, #tpu.memory_space<vmem>>, %arg3: memref<1x128xf32, #tpu.memory_space<vmem>>, %arg4: memref<128x128xbf16, #tpu.memory_space<vmem>>, %arg5: memref<1x128xf32, #tpu.memory_space<vmem>>, %arg6: memref<8x128xf32, #tpu.memory_space<vmem>>) attributes {dimension_semantics = [#tpu.dimension_semantics<parallel>], iteration_bounds = array<i64: 1>, scalar_prefetch = 0 : i64, scratch_operands = 0 : i64, tpu.core_type = #tpu.core_type<tc>, window_params = [{transform_indices = @transform_0, window_bounds = array<i64: 8, 128>}, {pipeline_mode = #tpu.pipeline_mode<synchronous>, transform_indices = @transform_1, window_bounds = array<i64: 128, 128>}, {pipeline_mode = #tpu.pipeline_mode<synchronous>, transform_indices = @transform_2, window_bounds = array<i64: 1, 128>}, {pipeline_mode = #tpu.pipeline_mode<synchronous>, transform_indices = @transform_3, window_bounds = array<i64: 128, 128>}, {pipeline_mode = #tpu.pipeline_mode<synchronous>, transform_indices = @transform_4, window_bounds = array<i64: 1, 128>}, {transform_indices = @transform_5, window_bounds = array<i64: 8, 128>}]} {
    %c0 = arith.constant 0 : index
    %c0_0 = arith.constant 0 : index
    %0 = vector.load %arg1[%c0, %c0_0] : memref<8x128xbf16, #tpu.memory_space<vmem>>, vector<8x128xbf16>
    %c0_1 = arith.constant 0 : index
    %c0_2 = arith.constant 0 : index
    %1 = vector.load %arg2[%c0_1, %c0_2] : memref<128x128xbf16, #tpu.memory_space<vmem>>, vector<128x128xbf16>
    %cst = arith.constant dense<0.000000e+00> : vector<8x128xf32>
    %2 = tpu.matmul %0, %1, %cst {dimension_numbers = #tpu.dot_dimension_numbers<[1], [0], [0], [1], [0, 0, 1, 1], [], []>} : vector<8x128xbf16>, vector<128x128xbf16>, vector<8x128xf32> -> vector<8x128xf32>
    %c0_3 = arith.constant 0 : index
    %c0_4 = arith.constant 0 : index
    %3 = vector.load %arg3[%c0_3, %c0_4] : memref<1x128xf32, #tpu.memory_space<vmem>>, vector<1x128xf32>
    %4 = vector.broadcast %3 : vector<1x128xf32> to vector<8x128xf32>
    %5 = arith.addf %2, %4 : vector<8x128xf32>
    %cst_5 = arith.constant 0.000000e+00 : f32
    %6 = vector.broadcast %cst_5 : f32 to vector<8x128xf32>
    %7 = arith.maximumf %5, %6 : vector<8x128xf32>
    %8 = arith.truncf %7 : vector<8x128xf32> to vector<8x128xbf16>
    %c0_6 = arith.constant 0 : index
    %c0_7 = arith.constant 0 : index
    %9 = vector.load %arg4[%c0_6, %c0_7] : memref<128x128xbf16, #tpu.memory_space<vmem>>, vector<128x128xbf16>
    %cst_8 = arith.constant dense<0.000000e+00> : vector<8x128xf32>
    %10 = tpu.matmul %8, %9, %cst_8 {dimension_numbers = #tpu.dot_dimension_numbers<[1], [0], [0], [1], [0, 0, 1, 1], [], []>} : vector<8x128xbf16>, vector<128x128xbf16>, vector<8x128xf32> -> vector<8x128xf32>
    %c0_9 = arith.constant 0 : index
    %c0_10 = arith.constant 0 : index
    %11 = vector.load %arg5[%c0_9, %c0_10] : memref<1x128xf32, #tpu.memory_space<vmem>>, vector<1x128xf32>
    %12 = vector.broadcast %11 : vector<1x128xf32> to vector<8x128xf32>
    %13 = arith.addf %10, %12 : vector<8x128xf32>
    %c0_11 = arith.constant 0 : index
    %c0_12 = arith.constant 0 : index
    %14 = vector.load %arg6[%c0_11, %c0_12] : memref<8x128xf32, #tpu.memory_space<vmem>>, vector<8x128xf32>
    tpu.vector_store %arg6[%c0_11, %c0_12], %13 {strides = array<i32>} : memref<8x128xf32, #tpu.memory_space<vmem>>, vector<8x128xf32>,
    return
  }
  func.func @transform_0(%arg0: i32) -> (i32, i32) {
    %c0_i32 = arith.constant 0 : i32
    %c0_i32_0 = arith.constant 0 : i32
    return %arg0, %c0_i32 : i32, i32
  }
  func.func @transform_1(%arg0: i32) -> (i32, i32) {
    %c0_i32 = arith.constant 0 : i32
    %c0_i32_0 = arith.constant 0 : i32
    %c0_i32_1 = arith.constant 0 : i32
    return %c0_i32, %c0_i32_0 : i32, i32
  }
  func.func @transform_2(%arg0: i32) -> (i32, i32) {
    %c0_i32 = arith.constant 0 : i32
    %c0_i32_0 = arith.constant 0 : i32
    %c0_i32_1 = arith.constant 0 : i32
    return %c0_i32, %c0_i32_0 : i32, i32
  }
  func.func @transform_3(%arg0: i32) -> (i32, i32) {
    %c0_i32 = arith.constant 0 : i32
    %c0_i32_0 = arith.constant 0 : i32
    %c0_i32_1 = arith.constant 0 : i32
    return %c0_i32, %c0_i32_0 : i32, i32
  }
  func.func @transform_4(%arg0: i32) -> (i32, i32) {
    %c0_i32 = arith.constant 0 : i32
    %c0_i32_0 = arith.constant 0 : i32
    %c0_i32_1 = arith.constant 0 : i32
    return %c0_i32, %c0_i32_0 : i32, i32
  }
  func.func @transform_5(%arg0: i32) -> (i32, i32) {
    %c0_i32 = arith.constant 0 : i32
    %c0_i32_0 = arith.constant 0 : i32
    return %arg0, %c0_i32 : i32, i32
  }
}

</mosaic_0001>

<bundles_post_ra>
// kernel: tpu_custom_call.1
= control target key start
LH: loop header
LB: loop body
LE: loop exit
PB: predicated region body
PF: predicated region fallthrough
CT: control target
= control target key end

     0   :  { %10 = vsyncpa [#allocation3], 0  ;;  %s494_s0 = inlined_call_operand.hbm [shape: bf16[8,128], index: 0, kind: input, shape index: {}]   ;;  %s495_s1 = inlined_call_operand.hbm [shape: bf16[128,128], index: 1, kind: input, shape index: {}]   ;;  %s496_s2 = inlined_call_operand.vmem [shape: f32[1,128], index: 2, kind: input, shape index: {}]   ;;  %s497_s3 = inlined_call_operand.hbm [shape: bf16[128,128], index: 3, kind: input, shape index: {}]   ;;  %s498_s4 = inlined_call_operand.vmem [shape: f32[1,128], index: 4, kind: input, shape index: {}]   ;;  %s499_s5 = inlined_call_operand.hbm [shape: f32[8,128], index: 5, kind: output, shape index: {}]  }
   0x1   :  { %11 = vsyncpa [#allocation6], 0  ;;  %s28_s20 = sshll.u32 %s495_s1, 4  ;;  %s29_s20 = int_to_ptr.hbm [resolvable:$true] %s28_s20 }
   0x2   :  { %12 = vsyncpa [#allocation4], 0  ;;  %s440_s21 = smov [#allocation5]   ;;  %s18_s25 = sshll.u32 %s494_s0, 4  ;;  %s19_s25 = int_to_ptr.hbm [resolvable:$true] %s18_s25 }
   0x3   :  { %s30_s22 = sshll.u32 %s440_s21, 4  ;;  %s441_s26 = smov 64   ;;  %s31_s22 = int_to_ptr.vmem [resolvable:$true] %s30_s22 }
   0x4   :  { %s442_s27 = smov 4   ;;  %s443_s28 = smov [#allocation2]  }
   0x5   :  { %36 = dma.hbm_to_vmem [thread:$0]  %s29_s20, 1024, %s31_s22, [#allocation6], %s441_s26, %s441_s26, %s442_s27  }
   0x6   :  { %s20_s29 = sshll.u32 %s443_s28, 4  ;;  %s43_s7 = sshll.u32 %s497_s3, 4  ;;  %s21_s29 = int_to_ptr.vmem [resolvable:$true] %s20_s29  ;;  %s44_s7 = int_to_ptr.hbm [resolvable:$true] %s43_s7 }
   0x7   :  { %23 = dma.hbm_to_vmem [thread:$0]  %s19_s25, 64, %s21_s29, [#allocation3]  }
   0x8   :  { %s444_s1 = smov [#allocation7]  }
   0x9   :  { %s45_s8 = sshll.u32 %s444_s1, 4  ;;  %s46_s8 = int_to_ptr.vmem [resolvable:$true] %s45_s8 }
   0xa   :  { %51 = dma.hbm_to_vmem [thread:$0]  %s44_s7, 1024, %s46_s8, [#allocation6], %s441_s26, %s441_s26, %s442_s27  }
   0xb   :  { %434 = dma.done.wait [#allocation3], 64  }
   0xc   :  { %435 = vsyncadd [#allocation3], 4294967232 }
   0xd   :  { %436 = dma.done.wait [#allocation6], 2048  }
   0xe   :  { %437 = vsyncadd [#allocation6], 4294965248  ;;  %v321_v0 = vld [vmem:[#allocation5 + $0x38] sm:$0xff]  ;;  %v320_v1 = vld [vmem:[#allocation5 + $0x30] sm:$0xff]  ;;  %s445_s11 = smov [#allocation8]   ;;  %s239_s15 = sshll.u32 %s499_s5, 4  ;;  %s240_s15 = int_to_ptr.hbm [resolvable:$true] %s239_s15 }
   0xf   :  { %135 = vmatpush.bf16.msra.mxu0 %v321_v0  ;;  %v329_v2 = vld [vmem:[#allocation7 + $0x38] sm:$0xff]  ;;  %v328_v3 = vld [vmem:[#allocation7 + $0x30] sm:$0xff]  ;;  %v319_v4 = vld [vmem:[#allocation5 + $0x28] sm:$0xff]  ;;  %s237_s12 = sshll.u32 %s445_s11, 4  ;;  %s238_s12 = int_to_ptr.vmem [resolvable:$true] %s237_s12 }
  0x10   :  { %218 = vmatpush.bf16.msra.mxu1 %v329_v2  ;;  %v327_v5 = vld [vmem:[#allocation7 + $0x28] sm:$0xff]  ;;  %v318_v6 = vld [vmem:[#allocation5 + $0x20] sm:$0xff]  ;;  %v317_v8 = vld [vmem:[#allocation5 + $0x18] sm:$0xff] }
  0x11   :  { %v326_v7 = vld [vmem:[#allocation7 + $0x20] sm:$0xff]  ;;  %v325_v9 = vld [vmem:[#allocation7 + $0x18] sm:$0xff]  ;;  %v316_v10 = vld [vmem:[#allocation5 + $0x10] sm:$0xff] }
  0x12   :  { %v324_v11 = vld [vmem:[#allocation7 + $0x10] sm:$0xff]  ;;  %v315_v12 = vld [vmem:[#allocation5 + $0x8] sm:$0xff]  ;;  %v314_v13 = vld [vmem:[#allocation5] sm:$0xff] }
  0x13   :  { %136 = vmatpush.bf16.msra.mxu0 %v320_v1  ;;  %v66_v14 = vld [vmem:[#allocation2] sm:$0xf]  ;;  %v323_v15 = vld [vmem:[#allocation7 + $0x8] sm:$0xff]  ;;  %v322_v16 = vld [vmem:[#allocation7] sm:$0xff] }
  0x14   :  { %219 = vmatpush.bf16.msra.mxu1 %v328_v3  ;;  %v336_v17 = vld [vmem:[%s496_s2] ss:$0 sm:$0xff] }
  0x15   :  { %v337_v23 = vld [vmem:[%s498_s4] ss:$0 sm:$0xff] }
  0x17   :  { %137 = vmatpush.bf16.msra.mxu0 %v319_v4 }
  0x18   :  { %220 = vmatpush.bf16.msra.mxu1 %v327_v5 }
  0x1b   :  { %138 = vmatpush.bf16.msra.mxu0 %v318_v6 }
  0x1c   :  { %221 = vmatpush.bf16.msra.mxu1 %v326_v7 }
  0x1f   :  { %139 = vmatpush.bf16.msra.mxu0 %v317_v8 }
  0x20   :  { %222 = vmatpush.bf16.msra.mxu1 %v325_v9 }
  0x23   :  { %140 = vmatpush.bf16.msra.mxu0 %v316_v10 }
  0x24   :  { %223 = vmatpush.bf16.msra.mxu1 %v324_v11 }
  0x27   :  { %141 = vmatpush.bf16.msra.mxu0 %v315_v12 }
  0x28   :  { %224 = vmatpush.bf16.msra.mxu1 %v323_v15 }
  0x2b   :  { %142 = vmatpush.bf16.msra.mxu0 %v314_v13 }
  0x2c   :  { %225 = vmatpush.bf16.msra.mxu1 %v322_v16 }
  0x2e   :  { %143 = vmatmul.bf16.vlgmr.msra.gmra.mxu0 %v66_v14 }
  0xab   :  { %v144_v18 = vpop.f32.mrf.mxu0 }
  0xac   :  { %v145_v19 = vadd.f32 %v336_v17, %v144_v18 }
  0xae   :  { %v148_v20 = vmax.f32 %v145_v19, 0.0 }
  0xb0   :  { %v149_v21 = vpack.c.bf16 %v148_v20, %v148_v20 }
  0xb2   :  { %226 = vmatmul.bf16.vlgmr.msra.gmra.mxu1 %v149_v21 }
  0xb3   :  { %v146_v22 = vpop.f32.mrf.mxu0 }
 0x12f   :  { %v227_v24 = vpop.f32.mrf.mxu1 }
 0x130   :  { %v228_v25 = vadd.f32 %v337_v23, %v227_v24 }
 0x132   :  { %231 = vst [vmem:[#allocation8] sm:$0xff] %v228_v25 }
 0x133   :  { %242 = dma.vmem_to_hbm [thread:$0]  %s238_s12, 128, %s240_s15, [#allocation4]  }
 0x137   :  { %v229_v26 = vpop.f32.mrf.mxu1 }
 0x138   :  { %438 = dma.done.wait [#allocation4], 128  }
 0x139   :  { %439 = vsyncadd [#allocation4], 4294967168 }
 0x13a   :  { %247 = vsyncpa [#allocation3], 1 }
 0x13b   :  { %248 = vsyncpa [#allocation6], 1 }
 0x13c   :  { %249 = vsyncpa [#allocation4], 1 }

</bundles_post_ra>
